<compile_context>
chip_gen: v5e
topology: v5e:2x2
jax: 0.10.0
libtpu: 0.0.40
codegen_flags: <defaults>
</compile_context>

<pallas_src>
import functools

import jax
import jax.numpy as jnp
from jax.experimental import pallas as pl
from jax.experimental.pallas import tpu as pltpu


def _round_up(x: int, m: int) -> int:
    return (x + m - 1) // m * m


def svm_kernel(x_ref, w_ref, b_ref, o_ref):
    # x_ref: (TM, D)   w_ref: (D, Cp)   b_ref: (1, Cp)   o_ref: (TM, Cp)
    # Linear: x @ W + b, f32 accumulation on the MXU (no in-kernel transpose).
    y = jnp.dot(x_ref[...], w_ref[...], preferred_element_type=jnp.float32)
    y = y + b_ref[...]                      # bias added in f32 before the cast
    # Dropout in eval mode is identity.
    o_ref[...] = y.astype(o_ref.dtype)


@functools.partial(jax.jit, static_argnames=("block_m",))
def svm_forward(x, weight, bias, *, block_m=128):
    """x: [B, D] f32, weight: [C, D] f32 (PyTorch layout), bias: [C] f32 -> [B, C] f32."""
    B, D = x.shape
    C, D2 = weight.shape
    assert D == D2, "weight feature dim must match x"

    # Lane-dense output: pad class dim up to a multiple of 128.
    Cp = _round_up(C, 128)
    # Batch tile: a multiple of 8 sublanes, capped at block_m.
    TM = min(block_m, _round_up(B, 8))
    Bp = _round_up(B, TM)

    # One-time wrapper-side layout prep (cheap XLA ops, outside the kernel):
    #   weight [C, D] -> transposed, class-padded [D, Cp]
    w_t = jnp.zeros((D, Cp), weight.dtype).at[:, :C].set(weight.T)
    #   bias [C] -> [1, Cp]
    b2 = jnp.zeros((1, Cp), bias.dtype).at[:, :C].set(bias)
    #   x batch-padded to a multiple of TM
    xp = x if Bp == B else jnp.pad(x, ((0, Bp - B), (0, 0)))

    out = pl.pallas_call(
        svm_kernel,
        out_shape=jax.ShapeDtypeStruct((Bp, Cp), x.dtype),
        grid_spec=pltpu.PrefetchScalarGridSpec(
            num_scalar_prefetch=0,
            grid=(Bp // TM,),
            in_specs=[
                pl.BlockSpec((TM, D), lambda i: (i, 0)),   # x tile marches over batch
                pl.BlockSpec((D, Cp), lambda i: (0, 0)),   # weight resident
                pl.BlockSpec((1, Cp), lambda i: (0, 0)),   # bias resident
            ],
            out_specs=pl.BlockSpec((TM, Cp), lambda i: (i, 0)),
        ),
        compiler_params=pltpu.CompilerParams(
            dimension_semantics=("parallel",),             # shard batch tiles across TCs
        ),
    )(xp, w_t, b2)

    # Strip batch/class padding.
    return out[:B, :C]


if __name__ == "__main__":
    # Small shapes consistent with the module: input_dim=32, num_classes=16, batch=8
    B, D, C = 8, 32, 16

    key = jax.random.PRNGKey(0)
    kx, kw, kb = jax.random.split(key, 3)

    x = jax.random.normal(kx, (B, D), dtype=jnp.float32)
    # Deterministic "init" mimicking nn.Linear's shapes (values are synthetic).
    bound = 1.0 / (D ** 0.5)
    weight = jax.random.uniform(kw, (C, D), dtype=jnp.float32,
                                minval=-bound, maxval=bound)
    bias = jax.random.uniform(kb, (C,), dtype=jnp.float32,
                              minval=-bound, maxval=bound)

    out = svm_forward(x, weight, bias)
    out = jax.block_until_ready(out)

    # Sanity-check against a plain-JAX reference (Linear + eval-mode Dropout).
    ref = x @ weight.T + bias
    assert out.shape == (B, C)
    assert jnp.allclose(out, ref, atol=1e-5, rtol=1e-5)

    print("KERNEL_OK")
</pallas_src>

<mosaic_0001>
module attributes {stable_mosaic.version = 11 : i64} {
  func.func @svm_kernel(%arg0: i32, %arg1: memref<8x32xf32, #tpu.memory_space<vmem>>, %arg2: memref<32x128xf32, #tpu.memory_space<vmem>>, %arg3: memref<1x128xf32, #tpu.memory_space<vmem>>, %arg4: memref<8x128xf32, #tpu.memory_space<vmem>>) attributes {dimension_semantics = [#tpu.dimension_semantics<parallel>], iteration_bounds = array<i64: 1>, scalar_prefetch = 0 : i64, scratch_operands = 0 : i64, tpu.core_type = #tpu.core_type<tc>, window_params = [{transform_indices = @transform_0, window_bounds = array<i64: 8, 32>}, {pipeline_mode = #tpu.pipeline_mode<synchronous>, transform_indices = @transform_1, window_bounds = array<i64: 32, 128>}, {pipeline_mode = #tpu.pipeline_mode<synchronous>, transform_indices = @transform_2, window_bounds = array<i64: 1, 128>}, {transform_indices = @transform_3, window_bounds = array<i64: 8, 128>}]} {
    %c0 = arith.constant 0 : index
    %c0_0 = arith.constant 0 : index
    %0 = vector.load %arg1[%c0, %c0_0] : memref<8x32xf32, #tpu.memory_space<vmem>>, vector<8x32xf32>
    %c0_1 = arith.constant 0 : index
    %c0_2 = arith.constant 0 : index
    %1 = vector.load %arg2[%c0_1, %c0_2] : memref<32x128xf32, #tpu.memory_space<vmem>>, vector<32x128xf32>
    %cst = arith.constant dense<0.000000e+00> : vector<8x128xf32>
    %2 = tpu.matmul %0, %1, %cst {dimension_numbers = #tpu.dot_dimension_numbers<[1], [0], [0], [1], [0, 0, 1, 1], [], []>} : vector<8x32xf32>, vector<32x128xf32>, vector<8x128xf32> -> vector<8x128xf32>
    %c0_3 = arith.constant 0 : index
    %c0_4 = arith.constant 0 : index
    %3 = vector.load %arg3[%c0_3, %c0_4] : memref<1x128xf32, #tpu.memory_space<vmem>>, vector<1x128xf32>
    %4 = vector.broadcast %3 : vector<1x128xf32> to vector<8x128xf32>
    %5 = arith.addf %2, %4 : vector<8x128xf32>
    %c0_5 = arith.constant 0 : index
    %c0_6 = arith.constant 0 : index
    %6 = vector.load %arg4[%c0_5, %c0_6] : memref<8x128xf32, #tpu.memory_space<vmem>>, vector<8x128xf32>
    tpu.vector_store %arg4[%c0_5, %c0_6], %5 {strides = array<i32>} : memref<8x128xf32, #tpu.memory_space<vmem>>, vector<8x128xf32>,
    return
  }
  func.func @transform_0(%arg0: i32) -> (i32, i32) {
    %c0_i32 = arith.constant 0 : i32
    %c0_i32_0 = arith.constant 0 : i32
    return %arg0, %c0_i32 : i32, i32
  }
  func.func @transform_1(%arg0: i32) -> (i32, i32) {
    %c0_i32 = arith.constant 0 : i32
    %c0_i32_0 = arith.constant 0 : i32
    %c0_i32_1 = arith.constant 0 : i32
    return %c0_i32, %c0_i32_0 : i32, i32
  }
  func.func @transform_2(%arg0: i32) -> (i32, i32) {
    %c0_i32 = arith.constant 0 : i32
    %c0_i32_0 = arith.constant 0 : i32
    %c0_i32_1 = arith.constant 0 : i32
    return %c0_i32, %c0_i32_0 : i32, i32
  }
  func.func @transform_3(%arg0: i32) -> (i32, i32) {
    %c0_i32 = arith.constant 0 : i32
    %c0_i32_0 = arith.constant 0 : i32
    return %arg0, %c0_i32 : i32, i32
  }
}

</mosaic_0001>

<bundles_post_ra>
// kernel: svm_forward.1
= control target key start
LH: loop header
LB: loop body
LE: loop exit
PB: predicated region body
PF: predicated region fallthrough
CT: control target
= control target key end

     0   :  { %s136_s0 = inlined_call_operand.vmem [shape: f32[8,32], index: 0, kind: input, shape index: {}]   ;;  %s137_s1 = inlined_call_operand.vmem [shape: f32[32,128], index: 1, kind: input, shape index: {}]   ;;  %s138_s2 = inlined_call_operand.vmem [shape: f32[1,128], index: 2, kind: input, shape index: {}]   ;;  %s139_s3 = inlined_call_operand.hbm [shape: f32[8,128], index: 3, kind: output, shape index: {}]  }
   0x1   :  { %v19_v0 = vld [vmem:[%s137_s1 + $0x18] sm:$0xff]  ;;  %v18_v1 = vld [vmem:[%s137_s1 + $0x10] sm:$0xff]  ;;  %v17_v2 = vld [vmem:[%s137_s1 + $0x8] sm:$0xff] }
   0x2   :  { %40 = vmatpush.msra.mxu0 %v19_v0 }
   0x3   :  { %8 = vsyncpa [#allocation3], 0  ;;  %v16_v3 = vld [vmem:[%s137_s1] sm:$0xff]  ;;  %vm24_vm0 = vcmask 261120   ;;  %s94_s24 = smov [#allocation2]   ;;  %s56_s28 = sshll.u32 %s139_s3, 4  ;;  %s57_s28 = int_to_ptr.hbm [resolvable:$true] %s56_s28 }
   0x4   :  { %41 = vmatpush.msra.mxu0 %v18_v1  ;;  %v15_v4 = vld [vmem:[%s136_s0] sm:$0xff]  ;;  %s54_s25 = sshll.u32 %s94_s24, 4  ;;  %s55_s25 = int_to_ptr.vmem [resolvable:$true] %s54_s25 }
   0x5   :  { %v67_v5 = vld [vmem:[%s138_s2] ss:$0 sm:$0xff] }
   0x6   :  { %42 = vmatpush.msra.mxu0 %v17_v2 }
   0x8   :  { %43 = vmatpush.msra.mxu0 %v16_v3 }
   0x9   :  { %65 = vmatmul.msk.f32.vlgmr.msra.gmra.mxu0 %vm24_vm0, %v15_v4 }
  0x86   :  { %v45_v6 = vpop.f32.mrf.mxu0 }
  0x87   :  { %v46_v7 = vadd.f32 %v67_v5, %v45_v6 }
  0x89   :  { %48 = vst [vmem:[#allocation2] sm:$0xff] %v46_v7 }
  0x8a   :  { %59 = dma.vmem_to_hbm [thread:$0]  %s55_s25, 128, %s57_s28, [#allocation3]  }
  0x8b   :  { %92 = dma.done.wait [#allocation3], 128  }
  0x8c   :  { %93 = vsyncadd [#allocation3], 4294967168 }
  0x8d   :  { %64 = vsyncpa [#allocation3], 1 }

</bundles_post_ra>
